<compile_context>
chip_gen: v5e
topology: v5e:2x2
jax: 0.10.0
libtpu: 0.0.40
codegen_flags: <defaults>
</compile_context>

<pallas_src>
import jax
import jax.numpy as jnp
from jax.experimental import pallas as pl
from jax.experimental.pallas import tpu as pltpu


def mlp_kernel(x_ref, w1_ref, b1_ref, w2_ref, b2_ref, o_ref):
    cdt = w1_ref.dtype                      # compute dtype (f32 or bf16)
    # fc1 on the MXU, f32 accumulation. Cast (if any) happens in VMEM, not HBM.
    h = jnp.dot(x_ref[...].astype(cdt), w1_ref[...],
                preferred_element_type=jnp.float32)
    # Bias + ReLU in f32 on the VPU.
    h = jnp.maximum(h + b1_ref[...], 0.0)
    # fc2 on the MXU, f32 accumulation.
    y = jnp.dot(h.astype(cdt), w2_ref[...],
                preferred_element_type=jnp.float32)
    o_ref[...] = (y + b2_ref[...]).astype(o_ref.dtype)


def prepare_params(w1, b1, w2, b2, compute_dtype=jnp.float32):
    """One-time cast/reshape of the parameters so repeated forward calls do no
    wrapper-side work on the weight side."""
    return (w1.astype(compute_dtype),
            b1.reshape(1, -1).astype(jnp.float32),
            w2.astype(compute_dtype),
            b2.reshape(1, -1).astype(jnp.float32))


def mlp_emotion_classifier(x, w1, b1, w2, b2, *, block_b=2048,
                           compute_dtype=jnp.float32,
                           xla_fallback_max_batch=0):
    """relu(x @ w1 + b1) @ w2 + b2 as one fused, batch-gridded Pallas kernel.

    x: [B, D]; w1: [D, H]; b1: [1, H] or [H]; w2: [H, C]; b2: [1, C] or [C]
    -> [B, C].  Weights are stored transposed relative to PyTorch ([in, out]).

    xla_fallback_max_batch: if B <= this, use a plain XLA matmul pair instead
    (pallas_call launch + wrapper overhead dominates for tiny batches).
    Default 0 == always use the Pallas kernel.
    """
    B, D = x.shape
    H = w1.shape[-1]
    C = w2.shape[-1]
    out_dtype = x.dtype

    b1f = b1.reshape(1, H).astype(jnp.float32)
    b2f = b2.reshape(1, C).astype(jnp.float32)

    if B <= xla_fallback_max_batch:
        h = jnp.maximum(x @ w1.astype(x.dtype) + b1f, 0.0)
        return (h @ w2.astype(x.dtype) + b2f).astype(out_dtype)

    # Tiny one-time casts (no-ops when already compute_dtype; see prepare_params).
    w1c = w1.astype(compute_dtype)
    w2c = w2.astype(compute_dtype)

    # Batch tile: whole batch if it fits in one tile (block == full dim, so no
    # alignment requirement); otherwise block_b (a multiple of 8), with a
    # partial final block handled by Pallas (OOB rows never written back).
    if B <= block_b:
        tb = B
    else:
        assert block_b % 8 == 0, "block_b must be a multiple of 8 (sublanes)"
        tb = block_b
    grid = (pl.cdiv(B, tb),)

    return pl.pallas_call(
        mlp_kernel,
        out_shape=jax.ShapeDtypeStruct((B, C), out_dtype),
        grid_spec=pltpu.PrefetchScalarGridSpec(
            num_scalar_prefetch=0,
            grid=grid,
            in_specs=[
                # Activation stream: tiled over batch, auto double-buffered.
                # Last dim D is the full array dim -> no 128-padding needed.
                pl.BlockSpec((tb, D), lambda i: (i, 0)),
                # Weights / biases: constant block index -> resident in VMEM,
                # DMA'd once per pallas_call rather than per batch tile.
                pl.BlockSpec((D, H), lambda i: (0, 0)),
                pl.BlockSpec((1, H), lambda i: (0, 0)),
                pl.BlockSpec((H, C), lambda i: (0, 0)),
                pl.BlockSpec((1, C), lambda i: (0, 0)),
            ],
            # Unpadded output stream: (tb, C) blocks, C == full last dim.
            out_specs=pl.BlockSpec((tb, C), lambda i: (i, 0)),
        ),
        compiler_params=pltpu.CompilerParams(
            # Batch tiles are independent.
            dimension_semantics=("parallel",),
        ),
    )(x, w1c, b1f, w2c, b2f)


def init_params(key, input_dim, hidden_dim, num_classes, dtype=jnp.float32):
    """Deterministic init mimicking PyTorch nn.Linear (uniform +/- 1/sqrt(fan_in)).
    Weights are returned already transposed to [in, out]."""
    k1, k2, k3, k4 = jax.random.split(key, 4)
    bound1 = 1.0 / (input_dim ** 0.5)
    bound2 = 1.0 / (hidden_dim ** 0.5)
    w1 = jax.random.uniform(k1, (input_dim, hidden_dim), dtype, -bound1, bound1)
    b1 = jax.random.uniform(k2, (1, hidden_dim), dtype, -bound1, bound1)
    w2 = jax.random.uniform(k3, (hidden_dim, num_classes), dtype, -bound2, bound2)
    b2 = jax.random.uniform(k4, (1, num_classes), dtype, -bound2, bound2)
    return w1, b1, w2, b2


def reference_forward(x, w1, b1, w2, b2):
    h = jnp.maximum(x @ w1 + b1, 0.0)
    return h @ w2 + b2


if __name__ == "__main__":
    input_dim, hidden_dim, num_classes = 32, 64, 8

    key = jax.random.PRNGKey(0)
    kx, kp = jax.random.split(key)
    w1, b1, w2, b2 = init_params(kp, input_dim, hidden_dim, num_classes)
    w1c, b1c, w2c, b2c = prepare_params(w1, b1, w2, b2)

    # Small single-tile case: batch=4 -> one (4, D) block, no padding anywhere.
    batch = 4
    x = jax.random.normal(kx, (batch, input_dim), dtype=jnp.float32)
    out = jax.block_until_ready(mlp_emotion_classifier(x, w1c, b1c, w2c, b2c))
    ref = reference_forward(x, w1, b1, w2, b2)
    assert out.shape == (batch, num_classes)
    # Relaxed tolerance: default MXU matmul precision may use bf16 passes.
    assert jnp.allclose(out, ref, atol=3e-2, rtol=3e-2)

    # Multi-tile case with a partial final block: batch=20, block_b=8 ->
    # 3 grid steps (8, 8, partial 4). Exercises resident weights, the batch
    # grid, and the unpadded output stream.
    batch2 = 20
    x2 = jax.random.normal(jax.random.PRNGKey(1), (batch2, input_dim), jnp.float32)
    out2 = jax.block_until_ready(
        mlp_emotion_classifier(x2, w1c, b1c, w2c, b2c, block_b=8))
    ref2 = reference_forward(x2, w1, b1, w2, b2)
    assert out2.shape == (batch2, num_classes)
    assert jnp.allclose(out2, ref2, atol=3e-2, rtol=3e-2)

    print("KERNEL_OK")
</pallas_src>

<mosaic_0001>
module attributes {stable_mosaic.version = 11 : i64} {
  func.func @mlp_kernel(%arg0: i32, %arg1: memref<4x32xf32, #tpu.memory_space<vmem>>, %arg2: memref<32x64xf32, #tpu.memory_space<vmem>>, %arg3: memref<1x64xf32, #tpu.memory_space<vmem>>, %arg4: memref<64x8xf32, #tpu.memory_space<vmem>>, %arg5: memref<1x8xf32, #tpu.memory_space<vmem>>, %arg6: memref<4x8xf32, #tpu.memory_space<vmem>>) attributes {dimension_semantics = [#tpu.dimension_semantics<parallel>], iteration_bounds = array<i64: 1>, scalar_prefetch = 0 : i64, scratch_operands = 0 : i64, tpu.core_type = #tpu.core_type<tc>, window_params = [{transform_indices = @transform_0, window_bounds = array<i64: 4, 32>}, {pipeline_mode = #tpu.pipeline_mode<synchronous>, transform_indices = @transform_1, window_bounds = array<i64: 32, 64>}, {pipeline_mode = #tpu.pipeline_mode<synchronous>, transform_indices = @transform_2, window_bounds = array<i64: 1, 64>}, {pipeline_mode = #tpu.pipeline_mode<synchronous>, transform_indices = @transform_3, window_bounds = array<i64: 64, 8>}, {pipeline_mode = #tpu.pipeline_mode<synchronous>, transform_indices = @transform_4, window_bounds = array<i64: 1, 8>}, {transform_indices = @transform_5, window_bounds = array<i64: 4, 8>}]} {
    %c0 = arith.constant 0 : index
    %c0_0 = arith.constant 0 : index
    %0 = vector.load %arg1[%c0, %c0_0] : memref<4x32xf32, #tpu.memory_space<vmem>>, vector<4x32xf32>
    %c0_1 = arith.constant 0 : index
    %c0_2 = arith.constant 0 : index
    %1 = vector.load %arg2[%c0_1, %c0_2] : memref<32x64xf32, #tpu.memory_space<vmem>>, vector<32x64xf32>
    %cst = arith.constant dense<0.000000e+00> : vector<4x64xf32>
    %2 = tpu.matmul %0, %1, %cst {dimension_numbers = #tpu.dot_dimension_numbers<[1], [0], [0], [1], [0, 0, 1, 1], [], []>} : vector<4x32xf32>, vector<32x64xf32>, vector<4x64xf32> -> vector<4x64xf32>
    %c0_3 = arith.constant 0 : index
    %c0_4 = arith.constant 0 : index
    %3 = vector.load %arg3[%c0_3, %c0_4] : memref<1x64xf32, #tpu.memory_space<vmem>>, vector<1x64xf32>
    %4 = vector.broadcast %3 : vector<1x64xf32> to vector<4x64xf32>
    %5 = arith.addf %2, %4 : vector<4x64xf32>
    %cst_5 = arith.constant 0.000000e+00 : f32
    %6 = vector.broadcast %cst_5 : f32 to vector<4x64xf32>
    %7 = arith.maximumf %5, %6 : vector<4x64xf32>
    %c0_6 = arith.constant 0 : index
    %c0_7 = arith.constant 0 : index
    %8 = vector.load %arg4[%c0_6, %c0_7] : memref<64x8xf32, #tpu.memory_space<vmem>>, vector<64x8xf32>
    %cst_8 = arith.constant dense<0.000000e+00> : vector<4x8xf32>
    %9 = tpu.matmul %7, %8, %cst_8 {dimension_numbers = #tpu.dot_dimension_numbers<[1], [0], [0], [1], [0, 0, 1, 1], [], []>} : vector<4x64xf32>, vector<64x8xf32>, vector<4x8xf32> -> vector<4x8xf32>
    %c0_9 = arith.constant 0 : index
    %c0_10 = arith.constant 0 : index
    %10 = vector.load %arg5[%c0_9, %c0_10] : memref<1x8xf32, #tpu.memory_space<vmem>>, vector<1x8xf32>
    %11 = vector.broadcast %10 : vector<1x8xf32> to vector<4x8xf32>
    %12 = arith.addf %9, %11 : vector<4x8xf32>
    %c0_11 = arith.constant 0 : index
    %c0_12 = arith.constant 0 : index
    %13 = vector.load %arg6[%c0_11, %c0_12] : memref<4x8xf32, #tpu.memory_space<vmem>>, vector<4x8xf32>
    tpu.vector_store %arg6[%c0_11, %c0_12], %12 {strides = array<i32>} : memref<4x8xf32, #tpu.memory_space<vmem>>, vector<4x8xf32>,
    return
  }
  func.func @transform_0(%arg0: i32) -> (i32, i32) {
    %c0_i32 = arith.constant 0 : i32
    %c0_i32_0 = arith.constant 0 : i32
    return %arg0, %c0_i32 : i32, i32
  }
  func.func @transform_1(%arg0: i32) -> (i32, i32) {
    %c0_i32 = arith.constant 0 : i32
    %c0_i32_0 = arith.constant 0 : i32
    %c0_i32_1 = arith.constant 0 : i32
    return %c0_i32, %c0_i32_0 : i32, i32
  }
  func.func @transform_2(%arg0: i32) -> (i32, i32) {
    %c0_i32 = arith.constant 0 : i32
    %c0_i32_0 = arith.constant 0 : i32
    %c0_i32_1 = arith.constant 0 : i32
    return %c0_i32, %c0_i32_0 : i32, i32
  }
  func.func @transform_3(%arg0: i32) -> (i32, i32) {
    %c0_i32 = arith.constant 0 : i32
    %c0_i32_0 = arith.constant 0 : i32
    %c0_i32_1 = arith.constant 0 : i32
    return %c0_i32, %c0_i32_0 : i32, i32
  }
  func.func @transform_4(%arg0: i32) -> (i32, i32) {
    %c0_i32 = arith.constant 0 : i32
    %c0_i32_0 = arith.constant 0 : i32
    %c0_i32_1 = arith.constant 0 : i32
    return %c0_i32, %c0_i32_0 : i32, i32
  }
  func.func @transform_5(%arg0: i32) -> (i32, i32) {
    %c0_i32 = arith.constant 0 : i32
    %c0_i32_0 = arith.constant 0 : i32
    return %arg0, %c0_i32 : i32, i32
  }
}

</mosaic_0001>

<bundles_post_ra>
// kernel: tpu_custom_call.1
= control target key start
LH: loop header
LB: loop body
LE: loop exit
PB: predicated region body
PF: predicated region fallthrough
CT: control target
= control target key end

     0   :  { %s219_s0 = inlined_call_operand.vmem [shape: f32[4,32], index: 0, kind: input, shape index: {}]   ;;  %s220_s1 = inlined_call_operand.vmem [shape: f32[32,64], index: 1, kind: input, shape index: {}]   ;;  %s221_s2 = inlined_call_operand.vmem [shape: f32[1,64], index: 2, kind: input, shape index: {}]   ;;  %s222_s3 = inlined_call_operand.vmem [shape: f32[64,8], index: 3, kind: input, shape index: {}]   ;;  %s223_s4 = inlined_call_operand.vmem [shape: f32[1,8], index: 4, kind: input, shape index: {}]   ;;  %s224_s5 = inlined_call_operand.hbm [shape: f32[4,8], index: 5, kind: output, shape index: {}]  }
   0x1   :  { %v25_v0 = vld [vmem:[%s220_s1 + $0x18] sm:$0xff]  ;;  %v24_v1 = vld [vmem:[%s220_s1 + $0x10] sm:$0xff]  ;;  %v23_v3 = vld [vmem:[%s220_s1 + $0x8] sm:$0xff] }
   0x2   :  { %46 = vmatpush.msra.mxu0 %v25_v0  ;;  %v62_v2 = vld [vmem:[%s222_s3 + $0x38] sm:$0xff]  ;;  %v61_v4 = vld [vmem:[%s222_s3 + $0x30] sm:$0xff]  ;;  %v60_v5 = vld [vmem:[%s222_s3 + $0x28] sm:$0xff] }
   0x3   :  { %79 = vmatpush.msra.mxu1 %v62_v2  ;;  %v22_v6 = vld [vmem:[%s220_s1] sm:$0xff] }
   0x4   :  { %47 = vmatpush.msra.mxu0 %v24_v1 }
   0x5   :  { %80 = vmatpush.msra.mxu1 %v61_v4 }
   0x6   :  { %10 = vsyncpa [#allocation3], 0  ;;  %48 = vmatpush.msra.mxu0 %v23_v3  ;;  %v21_v7 = vld [vmem:[%s219_s0] sm:$0xf]  ;;  %vm30_vm0 = vcmask 261120   ;;  %v58_v9 = vld [vmem:[%s222_s3 + $0x18] sm:$0xff] }
   0x7   :  { %v59_v8 = vld [vmem:[%s222_s3 + $0x20] sm:$0xff]  ;;  %81 = vmatpush.msra.mxu1 %v60_v5  ;;  %v57_v10 = vld [vmem:[%s222_s3 + $0x10] sm:$0xff]  ;;  %v56_v11 = vld [vmem:[%s222_s3 + $0x8] sm:$0xff]  ;;  %vm67_vm1 = vcmask 523264   ;;  %s140_s21 = smov [#allocation2]   ;;  %vm91_vm2 = vcmask 60416  }
   0x8   :  { %49 = vmatpush.msra.mxu0 %v22_v6  ;;  %v55_v12 = vld [vmem:[%s222_s3] sm:$0xff]  ;;  %s98_s22 = sshll.u32 %s140_s21, 4  ;;  %s100_s3 = sshll.u32 %s224_s5, 4  ;;  %s99_s22 = int_to_ptr.vmem [resolvable:$true] %s98_s22  ;;  %s101_s3 = int_to_ptr.hbm [resolvable:$true] %s100_s3 }
   0x9   :  { %109 = vmatmul.msk.f32.vlgmr.msra.gmra.mxu0 %vm30_vm0, %v21_v7  ;;  %82 = vmatpush.msra.mxu1 %v59_v8  ;;  %v112_v13 = vld [vmem:[%s221_s2] ss:$0 sm:$0xff] }
   0xa   :  { %v113_v17 = vld [vmem:[%s223_s4] ss:$0 sm:$0xff] }
   0xb   :  { %83 = vmatpush.msra.mxu1 %v58_v9 }
   0xd   :  { %84 = vmatpush.msra.mxu1 %v57_v10 }
   0xf   :  { %85 = vmatpush.msra.mxu1 %v56_v11 }
  0x11   :  { %86 = vmatpush.msra.mxu1 %v55_v12 }
  0x86   :  { %v51_v14 = vpop.f32.mrf.mxu0 }
  0x87   :  { %v52_v15 = vadd.f32 %v112_v13, %v51_v14 }
  0x89   :  { %v54_v16 = vmax.f32 %v52_v15, 0.0 }
  0x8b   :  { %110 = vmatmul.msk.f32.vlgmr.msra.gmra.mxu1 %vm67_vm1, %v54_v16 }
 0x108   :  { %v88_v18 = vpop.f32.mrf.mxu1 }
 0x109   :  { %v89_v19 = vadd.f32 %v113_v17, %v88_v18 }
 0x10b   :  { %92 = vst.msk [vmem:[#allocation2] sm:$0xf] %vm91_vm2, %v89_v19 }
 0x10c   :  { %103 = dma.vmem_to_hbm [thread:$0]  %s99_s22, 64, %s101_s3, [#allocation3]  }
 0x10d   :  { %138 = dma.done.wait [#allocation3], 64  }
 0x10e   :  { %139 = vsyncadd [#allocation3], 4294967232 }
 0x10f   :  { %108 = vsyncpa [#allocation3], 1 }

</bundles_post_ra>
